<compile_context>
chip_gen: v6e
topology: v6e:2x2x1
jax: 0.10.0
libtpu: 0.0.40
codegen_flags: <defaults>
</compile_context>

<pallas_src>
import functools

import jax
import jax.numpy as jnp
from jax.experimental import pallas as pl
from jax.experimental.pallas import tpu as pltpu

EPS = 1e-5  # PyTorch nn.LayerNorm default eps


def _mean_classifier_kernel(
    x_ref, g1_ref, b1_ref, g2_ref, b2_ref, w_ref, bias_ref,   # inputs
    o_ref,                                                     # output
    acc_ref,                                                   # (TB, F) f32 scratch
    *, n_true, n_pad, tn, matmul_dtype,
):
    k = pl.program_id(1)   # sequence (reduction) axis, placed last

    @pl.when(k == 0)
    def _init():
        acc_ref[...] = jnp.zeros_like(acc_ref)

    # ---- feature_norm: LayerNorm over last dim (biased variance), f32 math ----
    x = x_ref[...].astype(jnp.float32)                         # (TB, TN, F)
    mu = jnp.mean(x, axis=-1, keepdims=True)                   # (TB, TN, 1)
    var = jnp.mean((x - mu) ** 2, axis=-1, keepdims=True)
    xn = (x - mu) * jax.lax.rsqrt(var + EPS)
    xn = xn * g1_ref[...] + b1_ref[...]                        # (1, F) broadcasts

    # Mask padded sequence rows (only emitted when N was padded up to N_pad).
    if n_pad != n_true:
        row_ids = jax.lax.broadcasted_iota(jnp.int32, (tn, 1), 0) + k * tn
        valid = (row_ids < n_true).astype(jnp.float32)         # (TN, 1)
        xn = xn * valid[None, :, :]

    # Running per-row sum over the sequence axis; 1/N applied once at finalize.
    acc_ref[...] += jnp.sum(xn, axis=1)                        # (TB, F)

    @pl.when(k == pl.num_programs(1) - 1)
    def _finalize():
        m = acc_ref[...] * (1.0 / n_true)                      # (TB, F) sequence mean

        # classifier[0]: LayerNorm
        mu2 = jnp.mean(m, axis=-1, keepdims=True)
        var2 = jnp.mean((m - mu2) ** 2, axis=-1, keepdims=True)
        mn = (m - mu2) * jax.lax.rsqrt(var2 + EPS)
        mn = mn * g2_ref[...] + b2_ref[...]                    # (TB, F)

        # classifier[1]: Linear (F -> C), batched matmul, lane-dense (TB, C) store.
        lhs = mn.astype(matmul_dtype)
        rhs = w_ref[...].astype(matmul_dtype)
        logits = jnp.dot(lhs, rhs, preferred_element_type=jnp.float32)
        logits = logits + bias_ref[...].astype(jnp.float32)
        o_ref[...] = logits.astype(o_ref.dtype)


def mean_classifier(x, g1, b1, g2, b2, w_t, bias, *,
                    tb_target=128, tn_target=256, matmul_dtype=None):
    """x: (B, N, F); w_t: (F, C); returns (B, C)."""
    B, N, F = x.shape
    C = w_t.shape[1]
    if matmul_dtype is None:
        matmul_dtype = jnp.float32   # set jnp.bfloat16 on v6e/v7x for the MXU fast path

    # Batch tile: full B if small (block == full dim, no padding), else multiple-of-8 tile.
    if B <= tb_target:
        TB, B_pad = B, B
    else:
        TB = tb_target
        B_pad = pl.cdiv(B, TB) * TB
    # Sequence tile: full N if small, else multiple-of-8 tile with masked tail.
    if N <= tn_target:
        TN, N_pad = N, N
    else:
        TN = tn_target
        N_pad = pl.cdiv(N, TN) * TN

    if (B_pad, N_pad) != (B, N):
        x = jnp.pad(x, ((0, B_pad - B), (0, N_pad - N), (0, 0)))

    # 2-D views of the 1-D params so they live nicely in VMEM tiles.
    g1_2 = g1.reshape(1, F)
    b1_2 = b1.reshape(1, F)
    g2_2 = g2.reshape(1, F)
    b2_2 = b2.reshape(1, F)
    bias_2 = bias.reshape(1, C)

    grid = (B_pad // TB, N_pad // TN)
    full_f = pl.BlockSpec((1, F), lambda i, k: (0, 0))

    kernel = functools.partial(
        _mean_classifier_kernel,
        n_true=N, n_pad=N_pad, tn=TN, matmul_dtype=matmul_dtype,
    )

    # VMEM budget: double-buffered x stream + double-buffered params + scratch + output.
    x_item = jnp.dtype(x.dtype).itemsize
    w_item = jnp.dtype(w_t.dtype).itemsize
    need = (2 * TB * TN * F * x_item
            + 2 * (4 * F * 4 + F * C * w_item + C * 4)
            + TB * F * 4
            + 2 * TB * C * x_item)
    vmem_limit = int(min(max(2 * need, 16 * 1024 * 1024), 48 * 1024 * 1024))

    out = pl.pallas_call(
        kernel,
        out_shape=jax.ShapeDtypeStruct((B_pad, C), x.dtype),
        grid_spec=pltpu.PrefetchScalarGridSpec(
            num_scalar_prefetch=0,
            grid=grid,
            in_specs=[
                pl.BlockSpec((TB, TN, F), lambda i, k: (i, k, 0)),  # x tile
                full_f,                                             # feature_norm gamma
                full_f,                                             # feature_norm beta
                full_f,                                             # classifier LN gamma
                full_f,                                             # classifier LN beta
                pl.BlockSpec((F, C), lambda i, k: (0, 0)),          # linear weight (F, C)
                pl.BlockSpec((1, C), lambda i, k: (0, 0)),          # linear bias
            ],
            out_specs=pl.BlockSpec((TB, C), lambda i, k: (i, 0)),   # one lane-dense block / tile
            scratch_shapes=[pltpu.VMEM((TB, F), jnp.float32)],      # running sequence sum
        ),
        compiler_params=pltpu.CompilerParams(
            dimension_semantics=("parallel", "arbitrary"),
            vmem_limit_bytes=vmem_limit,
        ),
    )(x, g1_2, b1_2, g2_2, b2_2, w_t, bias_2)

    return out[:B] if B_pad != B else out


def _reference(x, g1, b1, g2, b2, w_t, bias):
    xf = x.astype(jnp.float32)
    mu = xf.mean(-1, keepdims=True)
    var = ((xf - mu) ** 2).mean(-1, keepdims=True)
    xn = (xf - mu) / jnp.sqrt(var + EPS) * g1 + b1
    m = xn.mean(axis=1)
    mu2 = m.mean(-1, keepdims=True)
    var2 = ((m - mu2) ** 2).mean(-1, keepdims=True)
    mn = (m - mu2) / jnp.sqrt(var2 + EPS) * g2 + b2
    return mn @ w_t + bias


if __name__ == "__main__":
    B, N, F, C = 2, 8, 32, 4  # batch, seq, input_dim, n_classes

    key = jax.random.PRNGKey(0)
    kx, kw, kb, kg1, kb1, kg2, kb2 = jax.random.split(key, 7)

    x = jax.random.normal(kx, (B, N, F), dtype=jnp.float32)

    # Deterministic synthetic parameters (nn.LayerNorm(F) x2 and nn.Linear(F, C)).
    g1 = 1.0 + 0.1 * jax.random.normal(kg1, (F,), dtype=jnp.float32)    # feature_norm.weight
    b1 = 0.1 * jax.random.normal(kb1, (F,), dtype=jnp.float32)          # feature_norm.bias
    g2 = 1.0 + 0.1 * jax.random.normal(kg2, (F,), dtype=jnp.float32)    # classifier[0].weight
    b2 = 0.1 * jax.random.normal(kb2, (F,), dtype=jnp.float32)          # classifier[0].bias
    w = jax.random.normal(kw, (C, F), dtype=jnp.float32) / jnp.sqrt(F)  # classifier[1].weight (C, F)
    bias = 0.1 * jax.random.normal(kb, (C,), dtype=jnp.float32)         # classifier[1].bias
    w_t = w.T  # (F, C)

    # Small-shape path: full-B / full-N tiles (no padding, no masking).
    out = mean_classifier(x, g1, b1, g2, b2, w_t, bias)
    out = jax.block_until_ready(out)
    ref = _reference(x, g1, b1, g2, b2, w_t, bias)
    assert out.shape == (B, C)
    assert jnp.allclose(out, ref, atol=1e-4, rtol=1e-4), (out, ref)

    # Tiled path: force batch/sequence tiling + tail masking with ragged B, N.
    B2, N2 = 10, 20
    x2 = jax.random.normal(jax.random.PRNGKey(1), (B2, N2, F), dtype=jnp.float32)
    out2 = mean_classifier(x2, g1, b1, g2, b2, w_t, bias, tb_target=8, tn_target=8)
    out2 = jax.block_until_ready(out2)
    ref2 = _reference(x2, g1, b1, g2, b2, w_t, bias)
    assert out2.shape == (B2, C)
    assert jnp.allclose(out2, ref2, atol=1e-4, rtol=1e-4), (out2, ref2)

    print("KERNEL_OK")
</pallas_src>

<mosaic_0001>
module attributes {stable_mosaic.version = 11 : i64} {
  func.func @_mean_classifier_kernel(%arg0: i32, %arg1: i32, %arg2: memref<2x8x32xf32, #tpu.memory_space<vmem>>, %arg3: memref<1x32xf32, #tpu.memory_space<vmem>>, %arg4: memref<1x32xf32, #tpu.memory_space<vmem>>, %arg5: memref<1x32xf32, #tpu.memory_space<vmem>>, %arg6: memref<1x32xf32, #tpu.memory_space<vmem>>, %arg7: memref<32x4xf32, #tpu.memory_space<vmem>>, %arg8: memref<1x4xf32, #tpu.memory_space<vmem>>, %arg9: memref<2x4xf32, #tpu.memory_space<vmem>>, %arg10: memref<2x32xf32, #tpu.memory_space<vmem>>) attributes {dimension_semantics = [#tpu.dimension_semantics<parallel>, #tpu.dimension_semantics<arbitrary>], iteration_bounds = array<i64: 1, 1>, scalar_prefetch = 0 : i64, scratch_operands = 1 : i64, tpu.core_type = #tpu.core_type<tc>, window_params = [{transform_indices = @transform_0, window_bounds = array<i64: 2, 8, 32>}, {pipeline_mode = #tpu.pipeline_mode<synchronous>, transform_indices = @transform_1, window_bounds = array<i64: 1, 32>}, {pipeline_mode = #tpu.pipeline_mode<synchronous>, transform_indices = @transform_2, window_bounds = array<i64: 1, 32>}, {pipeline_mode = #tpu.pipeline_mode<synchronous>, transform_indices = @transform_3, window_bounds = array<i64: 1, 32>}, {pipeline_mode = #tpu.pipeline_mode<synchronous>, transform_indices = @transform_4, window_bounds = array<i64: 1, 32>}, {pipeline_mode = #tpu.pipeline_mode<synchronous>, transform_indices = @transform_5, window_bounds = array<i64: 32, 4>}, {pipeline_mode = #tpu.pipeline_mode<synchronous>, transform_indices = @transform_6, window_bounds = array<i64: 1, 4>}, {transform_indices = @transform_7, window_bounds = array<i64: 2, 4>}]} {
    %c0_i32 = arith.constant 0 : i32
    %0 = arith.cmpi eq, %arg1, %c0_i32 : i32
    %1 = arith.extui %0 : i1 to i32
    %c0_i32_0 = arith.constant 0 : i32
    %2 = arith.cmpi ne, %1, %c0_i32_0 : i32
    scf.if %2 {
      %cst_18 = arith.constant 0.000000e+00 : f32
      %37 = vector.broadcast %cst_18 : f32 to vector<2x32xf32>
      %c0_19 = arith.constant 0 : index
      %c0_20 = arith.constant 0 : index
      %38 = vector.load %arg10[%c0_19, %c0_20] : memref<2x32xf32, #tpu.memory_space<vmem>>, vector<2x32xf32>
      tpu.vector_store %arg10[%c0_19, %c0_20], %37 {strides = array<i32>} : memref<2x32xf32, #tpu.memory_space<vmem>>, vector<2x32xf32>,
    } else {
    }
    %c0 = arith.constant 0 : index
    %c0_1 = arith.constant 0 : index
    %c0_2 = arith.constant 0 : index
    %3 = vector.load %arg2[%c0, %c0_1, %c0_2] : memref<2x8x32xf32, #tpu.memory_space<vmem>>, vector<2x8x32xf32>
    %cst = arith.constant dense<0.000000e+00> : vector<2x8xf32>
    %4 = vector.multi_reduction <add>, %3, %cst [2] : vector<2x8x32xf32> to vector<2x8xf32>
    %5 = vector.shape_cast %4 : vector<2x8xf32> to vector<2x8x1xf32>
    %cst_3 = arith.constant 3.200000e+01 : f32
    %6 = vector.broadcast %cst_3 : f32 to vector<2x8x1xf32>
    %7 = arith.divf %5, %6 : vector<2x8x1xf32>
    %8 = vector.broadcast %7 : vector<2x8x1xf32> to vector<2x8x32xf32>
    %9 = arith.subf %3, %8 : vector<2x8x32xf32>
    %10 = arith.mulf %9, %9 : vector<2x8x32xf32>
    %cst_4 = arith.constant dense<0.000000e+00> : vector<2x8xf32>
    %11 = vector.multi_reduction <add>, %10, %cst_4 [2] : vector<2x8x32xf32> to vector<2x8xf32>
    %12 = vector.shape_cast %11 : vector<2x8xf32> to vector<2x8x1xf32>
    %cst_5 = arith.constant 3.200000e+01 : f32
    %13 = vector.broadcast %cst_5 : f32 to vector<2x8x1xf32>
    %14 = arith.divf %12, %13 : vector<2x8x1xf32>
    %15 = vector.broadcast %7 : vector<2x8x1xf32> to vector<2x8x32xf32>
    %16 = arith.subf %3, %15 : vector<2x8x32xf32>
    %cst_6 = arith.constant 9.99999974E-6 : f32
    %17 = vector.broadcast %cst_6 : f32 to vector<2x8x1xf32>
    %18 = arith.addf %14, %17 : vector<2x8x1xf32>
    %19 = math.rsqrt %18 : vector<2x8x1xf32>
    %20 = vector.broadcast %19 : vector<2x8x1xf32> to vector<2x8x32xf32>
    %21 = arith.mulf %16, %20 : vector<2x8x32xf32>
    %c0_7 = arith.constant 0 : index
    %c0_8 = arith.constant 0 : index
    %22 = vector.load %arg3[%c0_7, %c0_8] : memref<1x32xf32, #tpu.memory_space<vmem>>, vector<1x32xf32>
    %23 = vector.shape_cast %22 : vector<1x32xf32> to vector<1x1x32xf32>
    %24 = vector.broadcast %23 : vector<1x1x32xf32> to vector<2x8x32xf32>
    %25 = arith.mulf %21, %24 : vector<2x8x32xf32>
    %c0_9 = arith.constant 0 : index
    %c0_10 = arith.constant 0 : index
    %26 = vector.load %arg4[%c0_9, %c0_10] : memref<1x32xf32, #tpu.memory_space<vmem>>, vector<1x32xf32>
    %27 = vector.shape_cast %26 : vector<1x32xf32> to vector<1x1x32xf32>
    %28 = vector.broadcast %27 : vector<1x1x32xf32> to vector<2x8x32xf32>
    %29 = arith.addf %25, %28 : vector<2x8x32xf32>
    %c0_11 = arith.constant 0 : index
    %c0_12 = arith.constant 0 : index
    %30 = vector.load %arg10[%c0_11, %c0_12] : memref<2x32xf32, #tpu.memory_space<vmem>>, vector<2x32xf32>
    %cst_13 = arith.constant dense<0.000000e+00> : vector<2x32xf32>
    %31 = vector.multi_reduction <add>, %29, %cst_13 [1] : vector<2x8x32xf32> to vector<2x32xf32>
    %32 = arith.addf %30, %31 : vector<2x32xf32>
    %c0_14 = arith.constant 0 : index
    %c0_15 = arith.constant 0 : index
    %33 = vector.load %arg10[%c0_14, %c0_15] : memref<2x32xf32, #tpu.memory_space<vmem>>, vector<2x32xf32>
    tpu.vector_store %arg10[%c0_14, %c0_15], %32 {strides = array<i32>} : memref<2x32xf32, #tpu.memory_space<vmem>>, vector<2x32xf32>,
    %c0_i32_16 = arith.constant 0 : i32
    %34 = arith.cmpi eq, %arg1, %c0_i32_16 : i32
    %35 = arith.extui %34 : i1 to i32
    %c0_i32_17 = arith.constant 0 : i32
    %36 = arith.cmpi ne, %35, %c0_i32_17 : i32
    scf.if %36 {
      %c0_18 = arith.constant 0 : index
      %c0_19 = arith.constant 0 : index
      %37 = vector.load %arg10[%c0_18, %c0_19] : memref<2x32xf32, #tpu.memory_space<vmem>>, vector<2x32xf32>
      %cst_20 = arith.constant 1.250000e-01 : f32
      %38 = vector.broadcast %cst_20 : f32 to vector<2x32xf32>
      %39 = arith.mulf %37, %38 : vector<2x32xf32>
      %cst_21 = arith.constant dense<0.000000e+00> : vector<2xf32>
      %40 = vector.multi_reduction <add>, %39, %cst_21 [1] : vector<2x32xf32> to vector<2xf32>
      %41 = vector.shape_cast %40 : vector<2xf32> to vector<2x1xf32>
      %cst_22 = arith.constant 3.200000e+01 : f32
      %42 = vector.broadcast %cst_22 : f32 to vector<2x1xf32>
      %43 = arith.divf %41, %42 : vector<2x1xf32>
      %44 = vector.broadcast %43 : vector<2x1xf32> to vector<2x32xf32>
      %45 = arith.subf %39, %44 : vector<2x32xf32>
      %46 = arith.mulf %45, %45 : vector<2x32xf32>
      %cst_23 = arith.constant dense<0.000000e+00> : vector<2xf32>
      %47 = vector.multi_reduction <add>, %46, %cst_23 [1] : vector<2x32xf32> to vector<2xf32>
      %48 = vector.shape_cast %47 : vector<2xf32> to vector<2x1xf32>
      %cst_24 = arith.constant 3.200000e+01 : f32
      %49 = vector.broadcast %cst_24 : f32 to vector<2x1xf32>
      %50 = arith.divf %48, %49 : vector<2x1xf32>
      %51 = vector.broadcast %43 : vector<2x1xf32> to vector<2x32xf32>
      %52 = arith.subf %39, %51 : vector<2x32xf32>
      %cst_25 = arith.constant 9.99999974E-6 : f32
      %53 = vector.broadcast %cst_25 : f32 to vector<2x1xf32>
      %54 = arith.addf %50, %53 : vector<2x1xf32>
      %55 = math.rsqrt %54 : vector<2x1xf32>
      %56 = vector.broadcast %55 : vector<2x1xf32> to vector<2x32xf32>
      %57 = arith.mulf %52, %56 : vector<2x32xf32>
      %c0_26 = arith.constant 0 : index
      %c0_27 = arith.constant 0 : index
      %58 = vector.load %arg5[%c0_26, %c0_27] : memref<1x32xf32, #tpu.memory_space<vmem>>, vector<1x32xf32>
      %59 = vector.broadcast %58 : vector<1x32xf32> to vector<2x32xf32>
      %60 = arith.mulf %57, %59 : vector<2x32xf32>
      %c0_28 = arith.constant 0 : index
      %c0_29 = arith.constant 0 : index
      %61 = vector.load %arg6[%c0_28, %c0_29] : memref<1x32xf32, #tpu.memory_space<vmem>>, vector<1x32xf32>
      %62 = vector.broadcast %61 : vector<1x32xf32> to vector<2x32xf32>
      %63 = arith.addf %60, %62 : vector<2x32xf32>
      %c0_30 = arith.constant 0 : index
      %c0_31 = arith.constant 0 : index
      %64 = vector.load %arg7[%c0_30, %c0_31] : memref<32x4xf32, #tpu.memory_space<vmem>>, vector<32x4xf32>
      %cst_32 = arith.constant dense<0.000000e+00> : vector<2x4xf32>
      %65 = tpu.matmul %63, %64, %cst_32 {dimension_numbers = #tpu.dot_dimension_numbers<[1], [0], [0], [1], [0, 0, 1, 1], [], []>} : vector<2x32xf32>, vector<32x4xf32>, vector<2x4xf32> -> vector<2x4xf32>
      %c0_33 = arith.constant 0 : index
      %c0_34 = arith.constant 0 : index
      %66 = vector.load %arg8[%c0_33, %c0_34] : memref<1x4xf32, #tpu.memory_space<vmem>>, vector<1x4xf32>
      %67 = vector.broadcast %66 : vector<1x4xf32> to vector<2x4xf32>
      %68 = arith.addf %65, %67 : vector<2x4xf32>
      %c0_35 = arith.constant 0 : index
      %c0_36 = arith.constant 0 : index
      %69 = vector.load %arg9[%c0_35, %c0_36] : memref<2x4xf32, #tpu.memory_space<vmem>>, vector<2x4xf32>
      tpu.vector_store %arg9[%c0_35, %c0_36], %68 {strides = array<i32>} : memref<2x4xf32, #tpu.memory_space<vmem>>, vector<2x4xf32>,
    } else {
    }
    return
  }
  func.func @transform_0(%arg0: i32, %arg1: i32) -> (i32, i32, i32) {
    %c0_i32 = arith.constant 0 : i32
    %c0_i32_0 = arith.constant 0 : i32
    return %arg0, %arg1, %c0_i32 : i32, i32, i32
  }
  func.func @transform_1(%arg0: i32, %arg1: i32) -> (i32, i32) {
    %c0_i32 = arith.constant 0 : i32
    %c0_i32_0 = arith.constant 0 : i32
    %c0_i32_1 = arith.constant 0 : i32
    return %c0_i32, %c0_i32_0 : i32, i32
  }
  func.func @transform_2(%arg0: i32, %arg1: i32) -> (i32, i32) {
    %c0_i32 = arith.constant 0 : i32
    %c0_i32_0 = arith.constant 0 : i32
    %c0_i32_1 = arith.constant 0 : i32
    return %c0_i32, %c0_i32_0 : i32, i32
  }
  func.func @transform_3(%arg0: i32, %arg1: i32) -> (i32, i32) {
    %c0_i32 = arith.constant 0 : i32
    %c0_i32_0 = arith.constant 0 : i32
    %c0_i32_1 = arith.constant 0 : i32
    return %c0_i32, %c0_i32_0 : i32, i32
  }
  func.func @transform_4(%arg0: i32, %arg1: i32) -> (i32, i32) {
    %c0_i32 = arith.constant 0 : i32
    %c0_i32_0 = arith.constant 0 : i32
    %c0_i32_1 = arith.constant 0 : i32
    return %c0_i32, %c0_i32_0 : i32, i32
  }
  func.func @transform_5(%arg0: i32, %arg1: i32) -> (i32, i32) {
    %c0_i32 = arith.constant 0 : i32
    %c0_i32_0 = arith.constant 0 : i32
    %c0_i32_1 = arith.constant 0 : i32
    return %c0_i32, %c0_i32_0 : i32, i32
  }
  func.func @transform_6(%arg0: i32, %arg1: i32) -> (i32, i32) {
    %c0_i32 = arith.constant 0 : i32
    %c0_i32_0 = arith.constant 0 : i32
    %c0_i32_1 = arith.constant 0 : i32
    return %c0_i32, %c0_i32_0 : i32, i32
  }
  func.func @transform_7(%arg0: i32, %arg1: i32) -> (i32, i32) {
    %c0_i32 = arith.constant 0 : i32
    %c0_i32_0 = arith.constant 0 : i32
    return %arg0, %c0_i32 : i32, i32
  }
}

</mosaic_0001>

<bundles_post_ra>
// kernel: tpu_custom_call.1
= control target key start
LH: loop header
LB: loop body
LE: loop exit
PB: predicated region body
PF: predicated region fallthrough
CT: control target
= control target key end

     0   :  { %vm35_vm0 = vcmask 261120   ;;  %s381_s0 = inlined_call_operand.vmem [shape: f32[2,8,32], index: 0, kind: input, shape index: {}]   ;;  %s382_s1 = inlined_call_operand.vmem [shape: f32[1,32], index: 1, kind: input, shape index: {}]   ;;  %s383_s2 = inlined_call_operand.vmem [shape: f32[1,32], index: 2, kind: input, shape index: {}]   ;;  %s384_s3 = inlined_call_operand.vmem [shape: f32[1,32], index: 3, kind: input, shape index: {}]   ;;  %s385_s4 = inlined_call_operand.vmem [shape: f32[1,32], index: 4, kind: input, shape index: {}]   ;;  %s386_s5 = inlined_call_operand.vmem [shape: f32[32,4], index: 5, kind: input, shape index: {}]   ;;  %s387_s6 = inlined_call_operand.vmem [shape: f32[1,4], index: 6, kind: input, shape index: {}]   ;;  %s388_s7 = inlined_call_operand.hbm [shape: f32[2,4], index: 7, kind: output, shape index: {}]  }
   0x1   :  { %v33_v0 = vld [vmem:[%s381_s0] sm:$0xff]  ;;  %v34_v1 = vld [vmem:[%s381_s0 + $0x8] sm:$0xff] }
   0x2   :  { %12 = vsyncpa [#allocation4], 0  ;;  %v36_v2 = vsel %vm35_vm0, %v33_v0, 0.0  ;;  %v39_v3 = vsel %vm35_vm0, %v34_v1, 0.0  ;;  %vm31_vm1 = vcmask 254976   ;;  %v291_v14 = vmov 0.0  }
   0x3   :  { %37 = vadd.xlane.f32.xlu0 %v36_v2  ;;  %32 = vst.msk [vmem:[#allocation2] sm:$0x3] %vm31_vm1, %v291_v14  ;;  %249 = vmatprep.subr.mxu0 %v291_v14  ;;  %v238_v22 = vld [vmem:[%s382_s1] ss:$0 sm:$0xff]  ;;  %vm98_vm2 = vcmask 1041409   ;;  %v141_v56 = vld [vmem:[%s386_s5 + $0x18] sm:$0xff] }
   0x4   :  { %v239_v24 = vld [vmem:[%s383_s2] ss:$0 sm:$0xff]  ;;  %v140_v57 = vld [vmem:[%s386_s5 + $0x10] sm:$0xff]  ;;  %250 = vmatpush3.msra.mxu0 %v141_v56  ;;  %vm292_vm3 = vmmov 0   ;;  %v139_v58 = vld [vmem:[%s386_s5 + $0x8] sm:$0xff]  ;;  %s293_s19 = smov [#allocation3]  }
   0x5   :  { %257 = vmatprep.mubr.msk.f32.mxu0 %vm292_vm3, %v291_v14  ;;  %251 = vmatprep.subr.mxu0 %v291_v14  ;;  %v138_v59 = vld [vmem:[%s386_s5] sm:$0xff]  ;;  %s230_s20 = sshll.u32 %s293_s19, 4  ;;  %vm222_vm4 = vcmask 25600   ;;  %s231_s20 = int_to_ptr.vmem [resolvable:$true] %s230_s20 }
   0x6   :  { %252 = vmatpush3.msra.mxu0 %v140_v57  ;;  %v241_v2 = vld [vmem:[%s385_s4] ss:$0 sm:$0xff]  ;;  %p274_p1 = scmp.lt.s32.totalorder %s231_s20, %s231_s20 }
   0x7   :  { %40 = vadd.xlane.f32.xlu0 %v39_v3  ;;  %253 = vmatprep.subr.mxu0 %v291_v14 }
   0x8   :  { %254 = vmatpush3.msra.mxu0 %v139_v58 }
   0x9   :  { %255 = vmatprep.subr.mxu0 %v291_v14 }
   0xa   :  { %v81_v43 = vld [vmem:[#allocation2] sm:$0x3]  ;;  %256 = vmatpush3.msra.mxu0 %v138_v59 }
  0x8c   :  { %v38_v4 = vpop.xlane.xlu0 %37 }
  0x8d   :  { %v43_v5 = vmul.f32 0.03125, %v38_v4 }
  0x8f   :  { %v45_v6 = vsub.f32 %v33_v0, %v43_v5  ;;  %v240_v0 = vld [vmem:[%s384_s3] ss:$0 sm:$0xff]  ;;  %s269_s3 = scalar_lea.vmem %s231_s20, 32 }
  0x90   :  { %v41_v7 = vpop.xlane.xlu0 %40  ;;  %v242_v5 = vld [vmem:[%s387_s6] ss:$0 sm:$0xff]  ;;  %p270_p0 = scmp.ne.s32.totalorder %s231_s20, %s269_s3  ;;  %p275_p2 = scmp.lt.s32.totalorder %s269_s3, %s269_s3 }
  0x91   :  { %v44_v8 = vmul.f32 0.03125, %v41_v7  ;;  %v47_v9 = vmul.f32 %v45_v6, %v45_v6 }
  0x92   :  { %p276_p3 = por %p275_p2, %p274_p1 }
  0x93   :  { %v46_v10 = vsub.f32 %v34_v1, %v44_v8  ;;  %v49_v11 = vsel %vm35_vm0, %v47_v9, 0.0 }
  0x94   :  { %50 = vadd.xlane.f32.xlu1 %v49_v11  ;;  %p277_p4 = pnand %p276_p3, %p270_p0 }
  0x95   :  { %v48_v12 = vmul.f32 %v46_v10, %v46_v10 }
  0x97   :  { %v52_v13 = vsel %vm35_vm0, %v48_v12, 0.0 }
  0x98   :  { %53 = vadd.xlane.f32.xlu1 %v52_v13 }
 0x11d   :  { %v51_v15 = vpop.xlane.xlu1 %50 }
 0x11e   :  { %v55_v16 = vmul.f32 0.03125, %v51_v15 }
 0x120   :  { %v57_v17 = vadd.f32 1e-05, %v55_v16 }
 0x121   :  { %v54_v18 = vpop.xlane.xlu1 %53 }
 0x122   :  { %263 = vrsqrt.f32 %v57_v17  ;;  %v56_v19 = vmul.f32 0.03125, %v54_v18 }
 0x124   :  { %v58_v20 = vadd.f32 1e-05, %v56_v19 }
 0x126   :  { %265 = vrsqrt.f32 %v58_v20 }
 0x12f   :  { %v264_v21 = vpop.eup %263 }
 0x130   :  { %v61_v23 = vmul.f32 %v264_v21, %v45_v6 }
 0x132   :  { %v70_v25 = vmul.f32 %v238_v22, %v61_v23 }
 0x133   :  { %v266_v26 = vpop.eup %265 }
 0x134   :  { %v79_v27 = vadd.f32 %v239_v24, %v70_v25  ;;  %v62_v28 = vmul.f32 %v266_v26, %v46_v10 }
 0x136   :  { %v82_v29 = vsel %vm35_vm0, %v79_v27, 0.0  ;;  %v71_v30 = vmul.f32 %v238_v22, %v62_v28 }
 0x137   :  { %v83_v31 = vrot.slane %v82_v29, 4 }
 0x138   :  { %v80_v32 = vadd.f32 %v239_v24, %v71_v30 }
 0x139   :  { %v84_v33 = vadd.f32 %v83_v31, %v82_v29 }
 0x13a   :  { %v89_v34 = vsel %vm35_vm0, %v80_v32, 0.0 }
 0x13b   :  { %v90_v35 = vrot.slane %v89_v34, 4  ;;  %v85_v36 = vrot.slane %v84_v33, 2 }
 0x13d   :  { %v91_v37 = vadd.f32 %v90_v35, %v89_v34  ;;  %v86_v38 = vadd.f32 %v85_v36, %v84_v33 }
 0x13f   :  { %v92_v39 = vrot.slane %v91_v37, 2  ;;  %v87_v40 = vrot.slane %v86_v38, 1 }
 0x141   :  { %v93_v41 = vadd.f32 %v92_v39, %v91_v37  ;;  %v88_v44 = vadd.f32 %v87_v40, %v86_v38 }
 0x143   :  { %v94_v42 = vrot.slane %v93_v41, 1 }
 0x145   :  { %v95_v45 = vadd.f32 %v94_v42, %v93_v41 }
 0x147   :  { %v99_v46 = vsel %vm98_vm2, %v95_v45, %v88_v44 }
 0x148   :  { %v101_v47 = vadd.f32 %v99_v46, %v81_v43 }
 0x14a   :  { %103 = vst.msk [vmem:[#allocation2] sm:$0x3] %vm31_vm1, %v101_v47 }
 0x151   :  { %v107_v48 = vld [vmem:[#allocation2] sm:$0x3] }
 0x152   :  { %v108_v49 = vmul.f32 0.125, %v107_v48 }
 0x154   :  { %v109_v50 = vsel %vm31_vm1, %v108_v49, 0.0 }
 0x155   :  { %110 = vadd.xlane.f32.xlu0 %v109_v50 }
 0x1de   :  { %v111_v51 = vpop.xlane.xlu0 %110 }
 0x1df   :  { %v112_v52 = vmul.f32 0.03125, %v111_v51 }
 0x1e1   :  { %v113_v53 = vsub.f32 %v108_v49, %v112_v52 }
 0x1e3   :  { %v114_v54 = vmul.f32 %v113_v53, %v113_v53 }
 0x1e5   :  { %v115_v55 = vsel %vm31_vm1, %v114_v54, 0.0 }
 0x1e6   :  { %116 = vadd.xlane.f32.xlu1 %v115_v55 }
 0x26f   :  { %v117_v60 = vpop.xlane.xlu1 %116 }
 0x270   :  { %v118_v61 = vmul.f32 0.03125, %v117_v60 }
 0x272   :  { %v119_v62 = vadd.f32 1e-05, %v118_v61 }
 0x274   :  { %267 = vrsqrt.f32 %v119_v62 }
 0x281   :  { %v268_v63 = vpop.eup %267 }
 0x282   :  { %v121_v1 = vmul.f32 %v268_v63, %v113_v53 }
 0x284   :  { %v129_v3 = vmul.f32 %v240_v0, %v121_v1 }
 0x286   :  { %v137_v4 = vadd.f32 %v241_v2, %v129_v3 }
 0x288   :  { %258 = vmatmul.mubr.msk.f32.vlgmr.msra.gmra.mxu0 %vm35_vm0, %v137_v4 }
 0x348   :  { %v218_v6 = vpop.f32.mrf.mxu0 }
 0x349   :  { %v219_v7 = vadd.f32 %v242_v5, %v218_v6 }
 0x34a   :  { %v259_v8 = vpop.f32.mrf.mxu0 }
 0x34b   :  { %223 = vst.msk [vmem:[#allocation3] sm:$0x3] %vm222_vm4, %v219_v7 }
 0x34c   :  { %280 = shalt.err (!%p277_p4)
}
 0x34d   :  { %233 = dma.vmem_to_hbm [thread:$0]  %s231_s20, 32, %s388_s7, [#allocation4]  }
 0x34e   :  { %289 = dma.done.wait [#allocation4], 32  }
 0x34f   :  { %290 = vsyncadd [#allocation4], 4294967264 }
 0x350   :  { %237 = vsyncpa [#allocation4], 1 }

</bundles_post_ra>
